<compile_context>
chip_gen: v6e
topology: v6e:2x2x1
jax: 0.10.0
libtpu: 0.0.40
codegen_flags: <defaults>
</compile_context>

<pallas_src>
import numpy as np
import jax
import jax.numpy as jnp
from jax.experimental import pallas as pl
from jax.experimental.pallas import tpu as pltpu


# ------------------------------ fused kernel -------------------------------

def edgnn_fused_kernel(eft_ref, h_ref, s_ref, t_ref, tt_ref, psrc_ref, pdst_ref,
                       wg_ref, ws_ref, wl_ref, b_ref, out_ref):
    """Fused edGNN layer forward.

    Stage 1 (group_apply_edges, group_by='src'):
        a     = [e_ft, h_src, h_dst] . w_group
        gamma = softmax(a) over edges sharing the same src
        e_w   = gamma * e_ft
    Stage 2 (gnn_msg + gnn_reduce):
        msg   = [h_src, e_w]
        a2    = msg . w_src_attn
        alpha = softmax(a2) over edges sharing the same dst (the mailbox)
        accum = sum over mailbox of alpha * msg     (scatter via T^T matmul)
    Stage 3 (node_update):
        h_out = relu( concat([h, accum]) @ W_lin + b )
    """
    M, E = eft_ref.shape                     # edges, edge_dim
    N, D = h_ref.shape                       # nodes, node_dim

    eft = eft_ref[...]                       # (M, E)  per-edge features
    h = h_ref[...]                           # (N, D)  node features
    S = s_ref[...]                           # (M, N)  one-hot src incidence
    T = t_ref[...]                           # (M, N)  one-hot dst incidence
    Tt = tt_ref[...]                         # (N, M)  = T^T (precomputed)
    Psrc = psrc_ref[...]                     # (M, M)  same-src indicator
    Pdst = pdst_ref[...]                     # (M, M)  same-dst indicator
    wg = ws = None
    wg = wg_ref[...]                         # (1, E + 2D), concat order [e, src, dst]
    ws = ws_ref[...]                         # (1, D + E),  concat order [h_src, e_w]

    # --- gather node features per edge: static topology -> one-hot MXU matmuls ---
    h_src = jnp.dot(S, h, preferred_element_type=jnp.float32)   # (M, D)
    h_dst = jnp.dot(T, h, preferred_element_type=jnp.float32)   # (M, D)

    # --- stage 1: per-src-group edge attention (scores on VPU/XLU) ---
    w_e = wg[:, :E]
    w_s = wg[:, E:E + D]
    w_d = wg[:, E + D:]
    a = (jnp.sum(eft * w_e, axis=-1, keepdims=True)
         + jnp.sum(h_src * w_s, axis=-1, keepdims=True)
         + jnp.sum(h_dst * w_d, axis=-1, keepdims=True))         # (M, 1)
    a = a - jnp.max(a, axis=0, keepdims=True)                    # global shift: softmax-invariant
    ea = jnp.exp(a)
    denom = jnp.dot(Psrc, ea, preferred_element_type=jnp.float32)  # per-src-group sums, (M, 1)
    gamma = ea / denom
    ew = gamma * eft                                             # (M, E) weighted edge features

    # --- stage 2: mailbox (per-dst) attention reduce ---
    msg = jnp.concatenate([h_src, ew], axis=1)                   # (M, D + E)
    a2 = jnp.sum(msg * ws, axis=-1, keepdims=True)               # (M, 1)
    a2 = a2 - jnp.max(a2, axis=0, keepdims=True)
    ea2 = jnp.exp(a2)
    denom2 = jnp.dot(Pdst, ea2, preferred_element_type=jnp.float32)  # per-dst-group sums
    alpha = ea2 / denom2
    accum = jnp.dot(Tt, alpha * msg,
                    preferred_element_type=jnp.float32)          # (N, D + E) scatter-reduce

    # --- stage 3: node update, single MXU pass + bias + relu ---
    hcat = jnp.concatenate([h, accum], axis=1)                   # (N, 2D + E)
    out = jnp.dot(hcat, wl_ref[...],
                  preferred_element_type=jnp.float32) + b_ref[...]
    out_ref[...] = jnp.maximum(out, 0.0).astype(out_ref.dtype)   # activation = relu
    # TODO(synk): dropout=None in this configuration, so nn.Dropout is a no-op and is omitted.


# ------------------------------ JAX wrapper --------------------------------

def edgnn_forward(node_features, edge_features, src, dst,
                  w_group, w_src_attn, w_lin_t, b_lin):
    N, D = node_features.shape
    M, E = edge_features.shape
    OUT = w_lin_t.shape[1]

    h = node_features.astype(jnp.float32)
    eft = edge_features.astype(jnp.float32)

    # Static topology -> dense one-hot incidence matrices (built once).
    S = jax.nn.one_hot(src, N, dtype=jnp.float32)        # (M, N): S[e, src(e)] = 1
    T = jax.nn.one_hot(dst, N, dtype=jnp.float32)        # (M, N): T[e, dst(e)] = 1
    Tt = T.T                                             # (N, M)
    Psrc = S @ S.T                                       # (M, M): same-src indicator
    Pdst = T @ T.T                                       # (M, M): same-dst indicator

    vmem = lambda: pl.BlockSpec(memory_space=pltpu.MemorySpace.VMEM)

    out = pl.pallas_call(
        edgnn_fused_kernel,
        out_shape=jax.ShapeDtypeStruct((N, OUT), jnp.float32),
        in_specs=[vmem() for _ in range(11)],
        out_specs=vmem(),
    )(eft, h, S, T, Tt, Psrc, Pdst, w_group, w_src_attn, w_lin_t, b_lin)
    return out


edgnn_forward_jit = jax.jit(edgnn_forward)


# ------------------------- pure-JAX reference check ------------------------

def edgnn_reference(h, eft, src, dst, dst_order, w_group, w_src_attn,
                    w_lin_t, b_lin, *, K):
    N, D = h.shape
    M, E = eft.shape
    # stage 1: edges grouped by src (edge order is already src-contiguous)
    eft_g = eft.reshape(N, K, E)
    z2 = jnp.concatenate(
        [eft_g, h[src].reshape(N, K, D), h[dst].reshape(N, K, D)], axis=2)
    a = z2 @ w_group[0][:, None]
    gamma = jax.nn.softmax(a, axis=1)
    ew = (gamma * eft_g).reshape(M, E)
    # stage 2: messages regrouped by dst (mailbox)
    msg = jnp.concatenate([h[src], ew], axis=1)[dst_order].reshape(N, K, D + E)
    a2 = msg @ w_src_attn[0][:, None]
    alpha = jax.nn.softmax(a2, axis=1)
    accum = jnp.sum(alpha * msg, axis=1)
    # stage 3: node update
    hcat = jnp.concatenate([h, accum], axis=1)
    return jnp.maximum(hcat @ w_lin_t + b_lin, 0.0)


# ---------------------------------- main -----------------------------------

if __name__ == "__main__":
    N, K = 16, 4          # nodes, (in == out) degree
    D, E = 8, 4           # node_dim, edge_dim
    OUT = 16              # out_feats

    # Static graph topology (regular ring-style graph).
    src_np = np.repeat(np.arange(N), K)                         # edge e = i*K + k -> src i
    dst_np = (src_np + 1 + np.tile(np.arange(K), N)) % N
    dst_order_np = np.argsort(dst_np, kind="stable").astype(np.int32)
    src = jnp.asarray(src_np, jnp.int32)
    dst = jnp.asarray(dst_np, jnp.int32)
    dst_order = jnp.asarray(dst_order_np, jnp.int32)

    # Deterministic parameters & inputs.
    key = jax.random.PRNGKey(0)
    k_h, k_e, k_wg, k_ws, k_wl, k_b = jax.random.split(key, 6)
    node_features = jax.random.normal(k_h, (N, D), jnp.float32)
    edge_features = jax.random.normal(k_e, (N * K, E), jnp.float32)

    w_group = 0.3 * jax.random.normal(k_wg, (1, 2 * D + E), jnp.float32)     # e_group_attn_fc.weight
    w_src_attn = 0.3 * jax.random.normal(k_ws, (1, D + E), jnp.float32)      # e_src_attn_fc.weight
    w_lin_t = 0.3 * jax.random.normal(k_wl, (2 * D + E, OUT), jnp.float32)   # linear.weight^T
    b_lin = 0.1 * jax.random.normal(k_b, (1, OUT), jnp.float32)              # linear.bias

    out = edgnn_forward_jit(node_features, edge_features, src, dst,
                            w_group, w_src_attn, w_lin_t, b_lin)
    out = jax.block_until_ready(out)

    ref = edgnn_reference(node_features, edge_features, src, dst, dst_order,
                          w_group, w_src_attn, w_lin_t, b_lin, K=K)
    np.testing.assert_allclose(np.asarray(out), np.asarray(ref), rtol=1e-5, atol=1e-5)

    print("KERNEL_OK")
</pallas_src>

<mosaic_0001>
module attributes {stable_mosaic.version = 11 : i64} {
  func.func @edgnn_fused_kernel(%arg0: memref<64x4xf32, #tpu.memory_space<vmem>>, %arg1: memref<16x8xf32, #tpu.memory_space<vmem>>, %arg2: memref<64x16xf32, #tpu.memory_space<vmem>>, %arg3: memref<64x16xf32, #tpu.memory_space<vmem>>, %arg4: memref<16x64xf32, #tpu.memory_space<vmem>>, %arg5: memref<64x64xf32, #tpu.memory_space<vmem>>, %arg6: memref<64x64xf32, #tpu.memory_space<vmem>>, %arg7: memref<1x20xf32, #tpu.memory_space<vmem>>, %arg8: memref<1x12xf32, #tpu.memory_space<vmem>>, %arg9: memref<20x16xf32, #tpu.memory_space<vmem>>, %arg10: memref<1x16xf32, #tpu.memory_space<vmem>>, %arg11: memref<16x16xf32, #tpu.memory_space<vmem>>) attributes {dimension_semantics = [], scalar_prefetch = 0 : i64, scratch_operands = 0 : i64, tpu.core_type = #tpu.core_type<tc>} {
    %c0 = arith.constant 0 : index
    %c0_0 = arith.constant 0 : index
    %0 = vector.load %arg0[%c0, %c0_0] : memref<64x4xf32, #tpu.memory_space<vmem>>, vector<64x4xf32>
    %c0_1 = arith.constant 0 : index
    %c0_2 = arith.constant 0 : index
    %1 = vector.load %arg1[%c0_1, %c0_2] : memref<16x8xf32, #tpu.memory_space<vmem>>, vector<16x8xf32>
    %c0_3 = arith.constant 0 : index
    %c0_4 = arith.constant 0 : index
    %2 = vector.load %arg2[%c0_3, %c0_4] : memref<64x16xf32, #tpu.memory_space<vmem>>, vector<64x16xf32>
    %c0_5 = arith.constant 0 : index
    %c0_6 = arith.constant 0 : index
    %3 = vector.load %arg3[%c0_5, %c0_6] : memref<64x16xf32, #tpu.memory_space<vmem>>, vector<64x16xf32>
    %c0_7 = arith.constant 0 : index
    %c0_8 = arith.constant 0 : index
    %4 = vector.load %arg4[%c0_7, %c0_8] : memref<16x64xf32, #tpu.memory_space<vmem>>, vector<16x64xf32>
    %c0_9 = arith.constant 0 : index
    %c0_10 = arith.constant 0 : index
    %5 = vector.load %arg5[%c0_9, %c0_10] : memref<64x64xf32, #tpu.memory_space<vmem>>, vector<64x64xf32>
    %c0_11 = arith.constant 0 : index
    %c0_12 = arith.constant 0 : index
    %6 = vector.load %arg6[%c0_11, %c0_12] : memref<64x64xf32, #tpu.memory_space<vmem>>, vector<64x64xf32>
    %c0_13 = arith.constant 0 : index
    %c0_14 = arith.constant 0 : index
    %7 = vector.load %arg7[%c0_13, %c0_14] : memref<1x20xf32, #tpu.memory_space<vmem>>, vector<1x20xf32>
    %c0_15 = arith.constant 0 : index
    %c0_16 = arith.constant 0 : index
    %8 = vector.load %arg8[%c0_15, %c0_16] : memref<1x12xf32, #tpu.memory_space<vmem>>, vector<1x12xf32>
    %cst = arith.constant dense<0.000000e+00> : vector<64x8xf32>
    %9 = tpu.matmul %2, %1, %cst {dimension_numbers = #tpu.dot_dimension_numbers<[1], [0], [0], [1], [0, 0, 1, 1], [], []>} : vector<64x16xf32>, vector<16x8xf32>, vector<64x8xf32> -> vector<64x8xf32>
    %cst_17 = arith.constant dense<0.000000e+00> : vector<64x8xf32>
    %10 = tpu.matmul %3, %1, %cst_17 {dimension_numbers = #tpu.dot_dimension_numbers<[1], [0], [0], [1], [0, 0, 1, 1], [], []>} : vector<64x16xf32>, vector<16x8xf32>, vector<64x8xf32> -> vector<64x8xf32>
    %11 = vector.extract_strided_slice %7 {offsets = [0, 0], sizes = [1, 4], strides = [1, 1]} : vector<1x20xf32> to vector<1x4xf32>
    %12 = vector.extract_strided_slice %7 {offsets = [0, 4], sizes = [1, 8], strides = [1, 1]} : vector<1x20xf32> to vector<1x8xf32>
    %13 = vector.extract_strided_slice %7 {offsets = [0, 12], sizes = [1, 8], strides = [1, 1]} : vector<1x20xf32> to vector<1x8xf32>
    %14 = vector.broadcast %11 : vector<1x4xf32> to vector<64x4xf32>
    %15 = arith.mulf %0, %14 : vector<64x4xf32>
    %cst_18 = arith.constant dense<0.000000e+00> : vector<64xf32>
    %16 = vector.multi_reduction <add>, %15, %cst_18 [1] : vector<64x4xf32> to vector<64xf32>
    %17 = vector.shape_cast %16 : vector<64xf32> to vector<64x1xf32>
    %18 = vector.broadcast %12 : vector<1x8xf32> to vector<64x8xf32>
    %19 = arith.mulf %9, %18 : vector<64x8xf32>
    %cst_19 = arith.constant dense<0.000000e+00> : vector<64xf32>
    %20 = vector.multi_reduction <add>, %19, %cst_19 [1] : vector<64x8xf32> to vector<64xf32>
    %21 = vector.shape_cast %20 : vector<64xf32> to vector<64x1xf32>
    %22 = arith.addf %17, %21 : vector<64x1xf32>
    %23 = vector.broadcast %13 : vector<1x8xf32> to vector<64x8xf32>
    %24 = arith.mulf %10, %23 : vector<64x8xf32>
    %cst_20 = arith.constant dense<0.000000e+00> : vector<64xf32>
    %25 = vector.multi_reduction <add>, %24, %cst_20 [1] : vector<64x8xf32> to vector<64xf32>
    %26 = vector.shape_cast %25 : vector<64xf32> to vector<64x1xf32>
    %27 = arith.addf %22, %26 : vector<64x1xf32>
    %cst_21 = arith.constant dense<0xFF800000> : vector<1xf32>
    %28 = vector.multi_reduction <maximumf>, %27, %cst_21 [0] : vector<64x1xf32> to vector<1xf32>
    %29 = vector.shape_cast %28 : vector<1xf32> to vector<1x1xf32>
    %30 = vector.broadcast %29 : vector<1x1xf32> to vector<64x1xf32>
    %31 = arith.subf %27, %30 : vector<64x1xf32>
    %32 = math.exp %31 : vector<64x1xf32>
    %cst_22 = arith.constant dense<0.000000e+00> : vector<64x1xf32>
    %33 = tpu.matmul %5, %32, %cst_22 {dimension_numbers = #tpu.dot_dimension_numbers<[1], [0], [0], [1], [0, 0, 1, 1], [], []>} : vector<64x64xf32>, vector<64x1xf32>, vector<64x1xf32> -> vector<64x1xf32>
    %34 = arith.divf %32, %33 : vector<64x1xf32>
    %35 = vector.broadcast %34 : vector<64x1xf32> to vector<64x4xf32>
    %36 = arith.mulf %35, %0 : vector<64x4xf32>
    %37 = tpu.concatenate %9, %36 in 1 : vector<64x8xf32>, vector<64x4xf32> -> vector<64x12xf32>
    %38 = vector.broadcast %8 : vector<1x12xf32> to vector<64x12xf32>
    %39 = arith.mulf %37, %38 : vector<64x12xf32>
    %cst_23 = arith.constant dense<0.000000e+00> : vector<64xf32>
    %40 = vector.multi_reduction <add>, %39, %cst_23 [1] : vector<64x12xf32> to vector<64xf32>
    %41 = vector.shape_cast %40 : vector<64xf32> to vector<64x1xf32>
    %cst_24 = arith.constant dense<0xFF800000> : vector<1xf32>
    %42 = vector.multi_reduction <maximumf>, %41, %cst_24 [0] : vector<64x1xf32> to vector<1xf32>
    %43 = vector.shape_cast %42 : vector<1xf32> to vector<1x1xf32>
    %44 = vector.broadcast %43 : vector<1x1xf32> to vector<64x1xf32>
    %45 = arith.subf %41, %44 : vector<64x1xf32>
    %46 = math.exp %45 : vector<64x1xf32>
    %cst_25 = arith.constant dense<0.000000e+00> : vector<64x1xf32>
    %47 = tpu.matmul %6, %46, %cst_25 {dimension_numbers = #tpu.dot_dimension_numbers<[1], [0], [0], [1], [0, 0, 1, 1], [], []>} : vector<64x64xf32>, vector<64x1xf32>, vector<64x1xf32> -> vector<64x1xf32>
    %48 = arith.divf %46, %47 : vector<64x1xf32>
    %49 = vector.broadcast %48 : vector<64x1xf32> to vector<64x12xf32>
    %50 = arith.mulf %49, %37 : vector<64x12xf32>
    %cst_26 = arith.constant dense<0.000000e+00> : vector<16x12xf32>
    %51 = tpu.matmul %4, %50, %cst_26 {dimension_numbers = #tpu.dot_dimension_numbers<[1], [0], [0], [1], [0, 0, 1, 1], [], []>} : vector<16x64xf32>, vector<64x12xf32>, vector<16x12xf32> -> vector<16x12xf32>
    %52 = tpu.concatenate %1, %51 in 1 : vector<16x8xf32>, vector<16x12xf32> -> vector<16x20xf32>
    %c0_27 = arith.constant 0 : index
    %c0_28 = arith.constant 0 : index
    %53 = vector.load %arg9[%c0_27, %c0_28] : memref<20x16xf32, #tpu.memory_space<vmem>>, vector<20x16xf32>
    %cst_29 = arith.constant dense<0.000000e+00> : vector<16x16xf32>
    %54 = tpu.matmul %52, %53, %cst_29 {dimension_numbers = #tpu.dot_dimension_numbers<[1], [0], [0], [1], [0, 0, 1, 1], [], []>} : vector<16x20xf32>, vector<20x16xf32>, vector<16x16xf32> -> vector<16x16xf32>
    %c0_30 = arith.constant 0 : index
    %c0_31 = arith.constant 0 : index
    %55 = vector.load %arg10[%c0_30, %c0_31] : memref<1x16xf32, #tpu.memory_space<vmem>>, vector<1x16xf32>
    %56 = vector.broadcast %55 : vector<1x16xf32> to vector<16x16xf32>
    %57 = arith.addf %54, %56 : vector<16x16xf32>
    %cst_32 = arith.constant 0.000000e+00 : f32
    %58 = vector.broadcast %cst_32 : f32 to vector<16x16xf32>
    %59 = arith.maximumf %57, %58 : vector<16x16xf32>
    %c0_33 = arith.constant 0 : index
    %c0_34 = arith.constant 0 : index
    %60 = vector.load %arg11[%c0_33, %c0_34] : memref<16x16xf32, #tpu.memory_space<vmem>>, vector<16x16xf32>
    tpu.vector_store %arg11[%c0_33, %c0_34], %59 {strides = array<i32>} : memref<16x16xf32, #tpu.memory_space<vmem>>, vector<16x16xf32>,
    return
  }
}

</mosaic_0001>

<bundles_post_ra>
// kernel: edgnn_forward.1
= control target key start
LH: loop header
LB: loop body
LE: loop exit
PB: predicated region body
PF: predicated region fallthrough
CT: control target
= control target key end

     0   :  { %vm85_vm0 = vcmask 130048   ;;  %vm358_vm1 = vcmask 31744   ;;  %s1536_s27 = smov 124   ;;  %s1966_s0 = inlined_call_operand.vmem [shape: f32[64,4], index: 0, kind: input, shape index: {}]   ;;  %s1967_s1 = inlined_call_operand.vmem [shape: f32[16,8], index: 1, kind: input, shape index: {}]   ;;  %s1968_s2 = inlined_call_operand.vmem [shape: f32[64,16], index: 2, kind: input, shape index: {}]   ;;  %s1969_s3 = inlined_call_operand.vmem [shape: f32[64,16], index: 3, kind: input, shape index: {}]   ;;  %s1970_s4 = inlined_call_operand.vmem [shape: f32[16,64], index: 4, kind: input, shape index: {}]   ;;  %s1971_s5 = inlined_call_operand.vmem [shape: f32[64,64], index: 5, kind: input, shape index: {}]   ;;  %s1972_s6 = inlined_call_operand.vmem [shape: f32[64,64], index: 6, kind: input, shape index: {}]   ;;  %s1973_s7 = inlined_call_operand.vmem [shape: f32[1,20], index: 7, kind: input, shape index: {}]   ;;  %s1974_s8 = inlined_call_operand.vmem [shape: f32[1,12], index: 8, kind: input, shape index: {}]   ;;  %s1975_s9 = inlined_call_operand.vmem [shape: f32[20,16], index: 9, kind: input, shape index: {}]   ;;  %s1976_s10 = inlined_call_operand.vmem [shape: f32[1,16], index: 10, kind: input, shape index: {}]   ;;  %s1977_s11 = inlined_call_operand.hbm [shape: f32[16,16], index: 11, kind: output, shape index: {}]  }
   0x1   :  { %v48_v0 = vld [vmem:[%s1967_s1 + $0x8] sm:$0xff]  ;;  %v47_v1 = vld [vmem:[%s1967_s1] sm:$0xff]  ;;  %v51_v6 = vld [vmem:[%s1968_s2 + $0x10] sm:$0xff] }
   0x2   :  { %1324 = vmatprep.subr.mxu0 %v48_v0  ;;  %1340 = vmatprep.subr.mxu1 %v48_v0  ;;  %v49_v2 = vld [vmem:[%s1968_s2] sm:$0xff]  ;;  %v50_v4 = vld [vmem:[%s1968_s2 + $0x8] sm:$0xff]  ;;  %v59_v7 = vld [vmem:[%s1969_s3 + $0x10] sm:$0xff] }
   0x3   :  { %1325 = vmatpush3.msra.mxu0 %v48_v0  ;;  %1341 = vmatpush3.msra.mxu1 %v48_v0  ;;  %v57_v3 = vld [vmem:[%s1969_s3] sm:$0xff]  ;;  %v58_v5 = vld [vmem:[%s1969_s3 + $0x8] sm:$0xff]  ;;  %v52_v11 = vld [vmem:[%s1968_s2 + $0x18] sm:$0xff] }
   0x4   :  { %1326 = vmatprep.subr.mxu0 %v47_v1  ;;  %1342 = vmatprep.subr.mxu1 %v47_v1  ;;  %v1233_v8 = vld [vmem:[%s1973_s7] ss:$0 sm:$0xff]  ;;  %v1641_v10 = vld [vmem:[%s1966_s0 + $0x8] sm:$0xff]  ;;  %v60_v12 = vld [vmem:[%s1969_s3 + $0x18] sm:$0xff] }
   0x5   :  { %1327 = vmatpush3.msra.mxu0 %v47_v1  ;;  %1328 = vmatprep.mubr.msk.f32.mxu0 %vm85_vm0, %v49_v2  ;;  %v1636_v9 = vld [vmem:[%s1966_s0] sm:$0xff] }
   0x6   :  { %1343 = vmatpush3.msra.mxu1 %v47_v1  ;;  %1344 = vmatprep.mubr.msk.f32.mxu1 %vm85_vm0, %v57_v3  ;;  %v350_v13 = vmul.f32 %v1233_v8, %v1636_v9  ;;  %v53_v14 = vld [vmem:[%s1968_s2 + $0x20] sm:$0xff] }
   0x7   :  { %1329 = vmatmul.mubr.msk.f32.vlgmr.msra.gmra.mxu0 %vm85_vm0, %v50_v4  ;;  %1345 = vmatmul.mubr.msk.f32.vlgmr.msra.gmra.mxu1 %vm85_vm0, %v58_v5  ;;  %v61_v15 = vld [vmem:[%s1969_s3 + $0x20] sm:$0xff] }
   0x8   :  { %1331 = vmatprep.mubr.msk.f32.mxu0 %vm85_vm0, %v51_v6  ;;  %1347 = vmatprep.mubr.msk.f32.mxu1 %vm85_vm0, %v59_v7 }
   0x9   :  { %383 = vrot.lane.b32.xlu0 %v1233_v8, %s1536_s27 }
   0xa   :  { %16 = vsyncpa [#allocation3], 0  ;;  %v359_v16 = vsel %vm358_vm1, %v350_v13, 0.0  ;;  %v351_v17 = vmul.f32 %v1233_v8, %v1641_v10  ;;  %v1665_v18 = vld [vmem:[%s1966_s0 + $0x18] sm:$0xff]  ;;  %v54_v19 = vld [vmem:[%s1968_s2 + $0x28] sm:$0xff]  ;;  %s1537_s19 = smov 116  }
   0xb   :  { %1332 = vmatmul.mubr.msk.f32.gmra.mxu0 %vm85_vm0, %v52_v11  ;;  %1348 = vmatmul.mubr.msk.f32.gmra.mxu1 %vm85_vm0, %v60_v12  ;;  %v62_v20 = vld [vmem:[%s1969_s3 + $0x28] sm:$0xff]  ;;  %v55_v21 = vld [vmem:[%s1968_s2 + $0x30] sm:$0xff]  ;;  %v353_v24 = vmul.f32 %v1233_v8, %v1665_v18  ;;  %v1688_v25 = vld [vmem:[%s1966_s0 + $0x20] sm:$0xff]  ;;  %vm394_vm2 = vcmask 64512   ;;  %vm507_vm3 = vcmask 523264   ;;  %vm755_vm4 = vcmask 97280  }
   0xc   :  { %1334 = vmatprep.mubr.msk.f32.mxu0 %vm85_vm0, %v53_v14  ;;  %1350 = vmatprep.mubr.msk.f32.mxu1 %vm85_vm0, %v61_v15  ;;  %v63_v22 = vld [vmem:[%s1969_s3 + $0x30] sm:$0xff]  ;;  %v362_v23 = vsel %vm358_vm1, %v351_v17, 0.0  ;;  %v56_v26 = vld [vmem:[%s1968_s2 + $0x38] sm:$0xff]  ;;  %v354_v29 = vmul.f32 %v1233_v8, %v1688_v25  ;;  %v1705_v30 = vld [vmem:[%s1966_s0 + $0x28] sm:$0xff]  ;;  %vm1118_vm5 = vcmask 1043456   ;;  %vm1111_vm6 = vcmask 162816  }
   0xd   :  { %427 = vrot.lane.b32.xlu0 %v1233_v8, %s1537_s19  ;;  %360 = vadd.xlane.f32.xlu1 %v359_v16  ;;  %v64_v27 = vld [vmem:[%s1969_s3 + $0x38] sm:$0xff]  ;;  %v368_v28 = vsel %vm358_vm1, %v353_v24, 0.0  ;;  %v355_v32 = vmul.f32 %v1233_v8, %v1705_v30  ;;  %v1712_v33 = vld [vmem:[%s1966_s0 + $0x30] sm:$0xff]  ;;  %s1540_s30 = smov [#allocation2]  }
   0xe   :  { %v371_v31 = vsel %vm358_vm1, %v354_v29, 0.0  ;;  %v356_v35 = vmul.f32 %v1233_v8, %v1712_v33  ;;  %v1720_v37 = vld [vmem:[%s1966_s0 + $0x10] sm:$0xff]  ;;  %v1725_v38 = vld [vmem:[%s1966_s0 + $0x38] sm:$0xff]  ;;  %s1206_s0 = sshll.u32 %s1540_s30, 4  ;;  %s1207_s0 = int_to_ptr.vmem [resolvable:$true] %s1206_s0 }
   0xf   :  { %1335 = vmatmul.mubr.msk.f32.gmra.mxu0 %vm85_vm0, %v54_v19  ;;  %1351 = vmatmul.mubr.msk.f32.gmra.mxu1 %vm85_vm0, %v62_v20  ;;  %v374_v34 = vsel %vm358_vm1, %v355_v32, 0.0  ;;  %v352_v39 = vmul.f32 %v1233_v8, %v1720_v37  ;;  %v357_v40 = vmul.f32 %v1233_v8, %v1725_v38  ;;  %p1519_p1 = scmp.lt.s32.totalorder %s1207_s0, %s1207_s0 }
  0x10   :  { %1337 = vmatprep.mubr.msk.f32.mxu0 %vm85_vm0, %v55_v21  ;;  %1353 = vmatprep.mubr.msk.f32.mxu1 %vm85_vm0, %v63_v22  ;;  %v377_v36 = vsel %vm358_vm1, %v356_v35, 0.0 }
  0x11   :  { %363 = vadd.xlane.f32.xlu1 %v362_v23  ;;  %v365_v41 = vsel %vm358_vm1, %v352_v39, 0.0  ;;  %v380_v42 = vsel %vm358_vm1, %v357_v40, 0.0 }
  0x13   :  { %1338 = vmatmul.mubr.msk.f32.gmra.mxu0 %vm85_vm0, %v56_v26  ;;  %1354 = vmatmul.mubr.msk.f32.gmra.mxu1 %vm85_vm0, %v64_v27 }
  0x15   :  { %369 = vadd.xlane.f32.xlu1 %v368_v28 }
  0x19   :  { %372 = vadd.xlane.f32.xlu1 %v371_v31 }
  0x1d   :  { %375 = vadd.xlane.f32.xlu1 %v374_v34 }
  0x21   :  { %378 = vadd.xlane.f32.xlu1 %v377_v36  ;;  %v67_v36 = vld [vmem:[%s1971_s5] sm:$0xff] }
  0x22   :  { %1372 = vmatprep.mubr.msk.f32.mxu0 %vm507_vm3, %v67_v36 }
  0x25   :  { %381 = vadd.xlane.f32.xlu1 %v380_v42 }
  0x2c   :  { %366 = vadd.xlane.f32.xlu0 %v365_v41 }
  0x7b   :  { %v384_v43 = vpop.permute.xlu0 %383 }
  0x7f   :  { %v428_v44 = vpop.permute.xlu0 %427 }
  0x96   :  { %v361_v35 = vpop.xlane.xlu1 %360 }
  0x9a   :  { %v364_v39 = vpop.xlane.xlu1 %363 }
  0x9e   :  { %v370_v40 = vpop.xlane.xlu1 %369 }
  0xa2   :  { %v373_v41 = vpop.xlane.xlu1 %372 }
  0xa6   :  { %v376_v42 = vpop.xlane.xlu1 %375 }
  0xc7   :  { %v1731_v45 = vpop.f32.mrf.mxu0  ;;  %v1346_v46 = vpop.f32.mrf.mxu1 }
  0xc8   :  { %v387_v47 = vmul.f32 %v1731_v45, %v384_v43  ;;  %v431_v48 = vmul.f32 %v1346_v46, %v428_v44 }
  0xc9   :  { %v1734_v49 = vpop.f32.mrf.mxu0  ;;  %v305_v50 = vpop.f32.mrf.mxu1 }
  0xca   :  { %v386_v51 = vmul.f32 %v384_v43, %v1734_v49  ;;  %v441_v52 = vsel %vm394_vm2, %v431_v48, 0.0  ;;  %v398_v53 = vsel %vm394_vm2, %v387_v47, 0.0  ;;  %v430_v59 = vmul.f32 %v428_v44, %v305_v50 }
  0xcb   :  { %v1739_v54 = vpop.f32.mrf.mxu0  ;;  %v1349_v55 = vpop.f32.mrf.mxu1  ;;  %442 = vadd.xlane.f32.xlu0 %v441_v52  ;;  %399 = vadd.xlane.f32.xlu1 %v398_v53 }
  0xcc   :  { %v389_v56 = vmul.f32 %v1739_v54, %v384_v43  ;;  %v433_v57 = vmul.f32 %v1349_v55, %v428_v44  ;;  %v395_v61 = vsel %vm394_vm2, %v386_v51, 0.0  ;;  %v438_v3 = vsel %vm394_vm2, %v430_v59, 0.0 }
  0xcd   :  { %v1742_v58 = vpop.f32.mrf.mxu0  ;;  %v315_v62 = vpop.f32.mrf.mxu1 }
  0xce   :  { %v404_v60 = vsel %vm394_vm2, %v389_v56, 0.0  ;;  %v447_v0 = vsel %vm394_vm2, %v433_v57, 0.0  ;;  %v388_v1 = vmul.f32 %v384_v43, %v1742_v58  ;;  %v432_v6 = vmul.f32 %v428_v44, %v315_v62 }
  0xcf   :  { %v1746_v63 = vpop.f32.mrf.mxu0  ;;  %405 = vadd.xlane.f32.xlu0 %v404_v60  ;;  %396 = vadd.xlane.f32.xlu1 %v395_v61  ;;  %v1352_v4 = vpop.f32.mrf.mxu1 }
  0xd0   :  { %v391_v2 = vmul.f32 %v1746_v63, %v384_v43  ;;  %v435_v7 = vmul.f32 %v1352_v4, %v428_v44  ;;  %v401_v11 = vsel %vm394_vm2, %v388_v1, 0.0  ;;  %v444_v17 = vsel %vm394_vm2, %v432_v6, 0.0 }
  0xd1   :  { %v1752_v5 = vpop.f32.mrf.mxu0  ;;  %v325_v12 = vpop.f32.mrf.mxu1 }
  0xd2   :  { %v410_v8 = vsel %vm394_vm2, %v391_v2, 0.0  ;;  %v390_v14 = vmul.f32 %v384_v43, %v1752_v5  ;;  %v453_v16 = vsel %vm394_vm2, %v435_v7, 0.0  ;;  %v434_v20 = vmul.f32 %v428_v44, %v325_v12 }
  0xd3   :  { %448 = vadd.xlane.f32.xlu0 %v447_v0  ;;  %439 = vadd.xlane.f32.xlu1 %v438_v3  ;;  %v1756_v13 = vpop.f32.mrf.mxu0  ;;  %v1355_v19 = vpop.f32.mrf.mxu1 }
  0xd4   :  { %v393_v15 = vmul.f32 %v1756_v13, %v384_v43  ;;  %v437_v21 = vmul.f32 %v1355_v19, %v428_v44  ;;  %v407_v23 = vsel %vm394_vm2, %v390_v14, 0.0  ;;  %v450_v28 = vsel %vm394_vm2, %v434_v20, 0.0 }
  0xd5   :  { %v1764_v24 = vpop.f32.mrf.mxu0  ;;  %v335_v29 = vpop.f32.mrf.mxu1 }
  0xd6   :  { %v416_v22 = vsel %vm394_vm2, %v393_v15, 0.0  ;;  %v392_v26 = vmul.f32 %v384_v43, %v1764_v24  ;;  %v459_v27 = vsel %vm394_vm2, %v437_v21, 0.0  ;;  %v436_v31 = vmul.f32 %v428_v44, %v335_v29  ;;  %v379_v43 = vpop.xlane.xlu1 %378  ;;  %v367_v44 = vpop.xlane.xlu0 %366 }
  0xd7   :  { %411 = vadd.xlane.f32.xlu0 %v410_v8  ;;  %402 = vadd.xlane.f32.xlu1 %v401_v11 }
  0xd8   :  { %v413_v32 = vsel %vm394_vm2, %v392_v26, 0.0  ;;  %v456_v34 = vsel %vm394_vm2, %v436_v31, 0.0 }
  0xda   :  { %v382_v46 = vpop.xlane.xlu1 %381 }
  0xdb   :  { %454 = vadd.xlane.f32.xlu0 %v453_v16  ;;  %445 = vadd.xlane.f32.xlu1 %v444_v17 }
  0xdf   :  { %417 = vadd.xlane.f32.xlu0 %v416_v22  ;;  %408 = vadd.xlane.f32.xlu1 %v407_v23 }
  0xe3   :  { %460 = vadd.xlane.f32.xlu0 %v459_v27  ;;  %451 = vadd.xlane.f32.xlu1 %v450_v28 }
  0xe7   :  { %414 = vadd.xlane.f32.xlu1 %v413_v32 }
  0xeb   :  { %457 = vadd.xlane.f32.xlu1 %v456_v34 }
 0x154   :  { %v443_v47 = vpop.xlane.xlu0 %442  ;;  %v400_v48 = vpop.xlane.xlu1 %399 }
 0x155   :  { %v420_v1 = vadd.f32 %v400_v48, %v364_v39 }
 0x157   :  { %v463_v19 = vadd.f32 %v443_v47, %v420_v1 }
 0x158   :  { %v406_v50 = vpop.xlane.xlu0 %405  ;;  %v397_v51 = vpop.xlane.xlu1 %396 }
 0x159   :  { %v419_v2 = vadd.f32 %v397_v51, %v361_v35  ;;  %v422_v11 = vadd.f32 %v406_v50, %v370_v40 }
 0x15c   :  { %v449_v52 = vpop.xlane.xlu0 %448  ;;  %v440_v53 = vpop.xlane.xlu1 %439 }
 0x15d   :  { %v462_v12 = vadd.f32 %v440_v53, %v419_v2  ;;  %v465_v21 = vadd.f32 %v449_v52, %v422_v11  ;;  %v68_v11 = vld [vmem:[%s1971_s5 + $0x8] sm:$0xff] }
 0x160   :  { %v412_v55 = vpop.xlane.xlu0 %411  ;;  %v403_v56 = vpop.xlane.xlu1 %402 }
 0x161   :  { %v424_v6 = vadd.f32 %v412_v55, %v376_v42  ;;  %v421_v14 = vadd.f32 %v403_v56, %v367_v44 }
 0x164   :  { %v455_v57 = vpop.xlane.xlu0 %454  ;;  %v446_v59 = vpop.xlane.xlu1 %445 }
 0x165   :  { %v467_v15 = vadd.f32 %v455_v57, %v424_v6  ;;  %v464_v22 = vadd.f32 %v446_v59, %v421_v14  ;;  %v70_v14 = vld [vmem:[%s1971_s5 + $0x18] sm:$0xff] }
 0x167   :  { %v471_v27 = vmax.f32 %v463_v19, %v467_v15 }
 0x168   :  { %v409_v60 = vpop.xlane.xlu1 %408  ;;  %v418_v61 = vpop.xlane.xlu0 %417 }
 0x169   :  { %v423_v0 = vadd.f32 %v409_v60, %v373_v41  ;;  %v426_v7 = vadd.f32 %v418_v61, %v382_v46 }
 0x16c   :  { %v452_v62 = vpop.xlane.xlu1 %451  ;;  %v461_v3 = vpop.xlane.xlu0 %460 }
 0x16d   :  { %v466_v8 = vadd.f32 %v452_v62, %v423_v0  ;;  %v469_v16 = vadd.f32 %v461_v3, %v426_v7 }
 0x16f   :  { %v470_v23 = vmax.f32 %v462_v12, %v466_v8  ;;  %v473_v28 = vmax.f32 %v465_v21, %v469_v16 }
 0x170   :  { %v415_v4 = vpop.xlane.xlu1 %414 }
 0x171   :  { %v425_v17 = vadd.f32 %v415_v4, %v379_v43  ;;  %v474_v31 = vmax.f32 %v470_v23, %v471_v27 }
 0x174   :  { %v458_v20 = vpop.xlane.xlu1 %457 }
 0x175   :  { %v468_v26 = vadd.f32 %v458_v20, %v425_v17  ;;  %v73_v17 = vld [vmem:[%s1971_s5 + $0x30] sm:$0xff]  ;;  %v1538_v20 = vmov 0  }
 0x176   :  { %1446 = vset.pattern.permute.xlu0 %v1538_v20  ;;  %1447 = vset.pattern.permute.xlu1 %v1538_v20 }
 0x177   :  { %v472_v29 = vmax.f32 %v464_v22, %v468_v26 }
 0x179   :  { %v475_v32 = vmax.f32 %v472_v29, %v473_v28 }
 0x17b   :  { %v476_v34 = vmax.f32 %v474_v31, %v475_v32 }
 0x17d   :  { %v477_v35 = vrot.slane %v476_v34, 4 }
 0x17f   :  { %v478_v36 = vmax.f32 %v476_v34, %v477_v35 }
 0x181   :  { %v479_v39 = vrot.slane %v478_v36, 2 }
 0x183   :  { %v480_v40 = vmax.f32 %v478_v36, %v479_v39 }
 0x185   :  { %v481_v41 = vrot.slane %v480_v40, 1 }
 0x187   :  { %v482_v42 = vmax.f32 %v480_v40, %v481_v41 }
 0x189   :  { %v489_v44 = vsub.f32 %v468_v26, %v482_v42  ;;  %v490_v43 = vsub.f32 %v469_v16, %v482_v42  ;;  %v488_v46 = vsub.f32 %v467_v15, %v482_v42  ;;  %v487_v50 = vsub.f32 %v466_v8, %v482_v42  ;;  %v71_v15 = vld [vmem:[%s1971_s5 + $0x20] sm:$0xff]  ;;  %v72_v16 = vld [vmem:[%s1971_s5 + $0x28] sm:$0xff] }
 0x18a   :  { %v486_v52 = vsub.f32 %v465_v21, %v482_v42  ;;  %v485_v55 = vsub.f32 %v464_v22, %v482_v42  ;;  %v484_v57 = vsub.f32 %v463_v19, %v482_v42  ;;  %v483_v60 = vsub.f32 %v462_v12, %v482_v42  ;;  %v69_v12 = vld [vmem:[%s1971_s5 + $0x10] sm:$0xff]  ;;  %v74_v19 = vld [vmem:[%s1971_s5 + $0x38] sm:$0xff]  ;;  %s1539_s5 = smov 8  }
 0x18b   :  { %v505_v47 = vmul.f32 1.442695, %v490_v43  ;;  %v503_v48 = vmul.f32 1.442695, %v489_v44  ;;  %v501_v51 = vmul.f32 1.442695, %v488_v46 }
 0x18c   :  { %v499_v53 = vmul.f32 1.442695, %v487_v50  ;;  %v497_v56 = vmul.f32 1.442695, %v486_v52  ;;  %v495_v59 = vmul.f32 1.442695, %v485_v55 }
 0x18d   :  { %1448 = vpow2.f32 %v505_v47  ;;  %v493_v61 = vmul.f32 1.442695, %v484_v57  ;;  %v491_v62 = vmul.f32 1.442695, %v483_v60 }
 0x18e   :  { %1450 = vpow2.f32 %v503_v48 }
 0x18f   :  { %1452 = vpow2.f32 %v501_v51 }
 0x190   :  { %1454 = vpow2.f32 %v499_v53 }
 0x191   :  { %1456 = vpow2.f32 %v497_v56 }
 0x192   :  { %1458 = vpow2.f32 %v495_v59 }
 0x193   :  { %1460 = vpow2.f32 %v493_v61 }
 0x194   :  { %1462 = vpow2.f32 %v491_v62 }
 0x19a   :  { %v1775_v0 = vpop.eup %1448 }
 0x19b   :  { %1356 = vmatprep.subr.mxu0 %v1775_v0  ;;  %v1778_v1 = vpop.eup %1450 }
 0x19c   :  { %1357 = vmatpush3.msra.mxu0 %v1775_v0  ;;  %v1782_v2 = vpop.eup %1452 }
 0x19d   :  { %1358 = vmatprep.subr.mxu0 %v1778_v1  ;;  %v1786_v3 = vpop.eup %1454 }
 0x19e   :  { %1359 = vmatpush3.msra.mxu0 %v1778_v1  ;;  %v1457_v4 = vpop.eup %1456 }
 0x19f   :  { %1360 = vmatprep.subr.mxu0 %v1782_v2  ;;  %v1459_v6 = vpop.eup %1458 }
 0x1a0   :  { %1361 = vmatpush3.msra.mxu0 %v1782_v2  ;;  %v1461_v7 = vpop.eup %1460 }
 0x1a1   :  { %1362 = vmatprep.subr.mxu0 %v1786_v3  ;;  %v1463_v8 = vpop.eup %1462 }
 0x1a2   :  { %1363 = vmatpush3.msra.mxu0 %v1786_v3 }
 0x1a3   :  { %1364 = vmatprep.subr.mxu0 %v1457_v4 }
 0x1a4   :  { %1365 = vmatpush3.msra.mxu0 %v1457_v4 }
 0x1a5   :  { %1366 = vmatprep.subr.mxu0 %v1459_v6 }
 0x1a6   :  { %1367 = vmatpush3.msra.mxu0 %v1459_v6 }
 0x1a7   :  { %1368 = vmatprep.subr.mxu0 %v1461_v7 }
 0x1a8   :  { %1369 = vmatpush3.msra.mxu0 %v1461_v7 }
 0x1a9   :  { %1370 = vmatprep.subr.mxu0 %v1463_v8 }
 0x1aa   :  { %1371 = vmatpush3.msra.mxu0 %v1463_v8 }
 0x1ab   :  { %1373 = vmatmul.mubr.msk.f32.vlgmr.msra.gmra.mxu0 %vm507_vm3, %v68_v11 }
 0x1ac   :  { %1375 = vmatprep.mubr.msk.f32.mxu0 %vm507_vm3, %v69_v12 }
 0x1af   :  { %1376 = vmatmul.mubr.msk.f32.gmra.mxu0 %vm507_vm3, %v70_v14 }
 0x1b0   :  { %1378 = vmatprep.mubr.msk.f32.mxu0 %vm507_vm3, %v71_v15 }
 0x1b3   :  { %1379 = vmatmul.mubr.msk.f32.gmra.mxu0 %vm507_vm3, %v72_v16 }
 0x1b4   :  { %1381 = vmatprep.mubr.msk.f32.mxu0 %vm507_vm3, %v73_v17 }
 0x1b7   :  { %1382 = vmatmul.mubr.msk.f32.gmra.mxu0 %vm507_vm3, %v74_v19 }
 0x26b   :  { %v1374_v21 = vpop.f32.mrf.mxu0 }
 0x26c   :  { %1464 = vrcp.f32 %v1374_v21 }
 0x26d   :  { %v598_v22 = vpop.f32.mrf.mxu0 }
 0x26e   :  { %1466 = vrcp.f32 %v598_v22 }
 0x26f   :  { %v1377_v23 = vpop.f32.mrf.mxu0 }
 0x270   :  { %1468 = vrcp.f32 %v1377_v23 }
 0x271   :  { %v608_v26 = vpop.f32.mrf.mxu0 }
 0x272   :  { %1470 = vrcp.f32 %v608_v26 }
 0x273   :  { %v1380_v27 = vpop.f32.mrf.mxu0 }
 0x274   :  { %1472 = vrcp.f32 %v1380_v27 }
 0x275   :  { %v618_v28 = vpop.f32.mrf.mxu0 }
 0x276   :  { %1474 = vrcp.f32 %v618_v28 }
 0x277   :  { %v1383_v31 = vpop.f32.mrf.mxu0 }
 0x279   :  { %v1465_v29 = vpop.eup %1464  ;;  %v628_v39 = vpop.f32.mrf.mxu0 }
 0x27a   :  { %v640_v32 = vmul.f32 %v1465_v29, %v1461_v7  ;;  %1476 = vrcp.f32 %v628_v39 }
 0x27b   :  { %v1467_v34 = vpop.eup %1466  ;;  %1478 = vrcp.f32 %v1383_v31 }
 0x27c   :  { %660 = vperm.xlu0 %1446, %v640_v32   ;;  %v638_v35 = vmul.f32 %v1467_v34, %v1463_v8 }
 0x27d   :  { %v1469_v36 = vpop.eup %1468 }
 0x27e   :  { %655 = vperm.xlu1 %1447, %v638_v35   ;;  %v644_v40 = vmul.f32 %v1469_v36, %v1457_v4 }
 0x27f   :  { %v1471_v41 = vpop.eup %1470 }
 0x280   :  { %v642_v42 = vmul.f32 %v1471_v41, %v1459_v6 }
 0x281   :  { %v1473_v44 = vpop.eup %1472 }
 0x282   :  { %670 = vperm.xlu1 %1447, %v644_v40   ;;  %v648_v43 = vmul.f32 %v1473_v44, %v1782_v2 }
 0x283   :  { %v1475_v46 = vpop.eup %1474 }
 0x284   :  { %v646_v47 = vmul.f32 %v1475_v46, %v1786_v3 }
 0x286   :  { %665 = vperm.xlu1 %1447, %v642_v42  }
 0x287   :  { %v1477_v48 = vpop.eup %1476 }
 0x288   :  { %v650_v50 = vmul.f32 %v1477_v48, %v1778_v1  ;;  %v1479_v51 = vpop.eup %1478 }
 0x289   :  { %v652_v52 = vmul.f32 %v1479_v51, %v1775_v0 }
 0x28a   :  { %680 = vperm.xlu1 %1447, %v648_v43  }
 0x28e   :  { %675 = vperm.xlu1 %1447, %v646_v47  }
 0x292   :  { %685 = vperm.xlu1 %1447, %v650_v50  }
 0x296   :  { %690 = vperm.xlu1 %1447, %v652_v52  }
 0x2f7   :  { %v661_v53 = vpop.permute.xlu0 %660 }
 0x2f8   :  { %v694_v55 = vmul.f32 %v661_v53, %v1641_v10 }
 0x2f9   :  { %v656_v56 = vpop.permute.xlu1 %655 }
 0x2fa   :  { %711 = vrot.lane.b32.xlu1 %v694_v55, %s1539_s5  ;;  %v693_v57 = vmul.f32 %v656_v56, %v1636_v9 }
 0x2fd   :  { %v671_v59 = vpop.permute.xlu1 %670 }
 0x2fe   :  { %709 = vrot.lane.b32.xlu1 %v693_v57, %s1539_s5  ;;  %v696_v60 = vmul.f32 %v671_v59, %v1665_v18 }
 0x301   :  { %v666_v61 = vpop.permute.xlu1 %665 }
 0x302   :  { %v695_v62 = vmul.f32 %v666_v61, %v1720_v37  ;;  %715 = vrot.lane.b32.xlu1 %v696_v60, %s1539_s5 }
 0x304   :  { %713 = vrot.lane.b32.xlu0 %v695_v62, %s1539_s5 }
 0x305   :  { %v681_v0 = vpop.permute.xlu1 %680 }
 0x306   :  { %v698_v10 = vmul.f32 %v681_v0, %v1705_v30  ;;  %v1242_v30 = vld [vmem:[%s1974_s8] ss:$0 sm:$0xff] }
 0x308   :  { %719 = vrot.lane.b32.xlu1 %v698_v10, %s1539_s5 }
 0x309   :  { %v676_v1 = vpop.permute.xlu1 %675 }
 0x30a   :  { %v697_v9 = vmul.f32 %v676_v1, %v1688_v25 }
 0x30c   :  { %717 = vrot.lane.b32.xlu0 %v697_v9, %s1539_s5 }
 0x30d   :  { %v686_v2 = vpop.permute.xlu1 %685 }
 0x30e   :  { %v699_v18 = vmul.f32 %v686_v2, %v1712_v33 }
 0x310   :  { %721 = vrot.lane.b32.xlu0 %v699_v18, %s1539_s5 }
 0x311   :  { %v691_v37 = vpop.permute.xlu1 %690 }
 0x312   :  { %v700_v3 = vmul.f32 %v691_v37, %v1725_v38 }
 0x314   :  { %723 = vrot.lane.b32.xlu1 %v700_v3, %s1539_s5 }
 0x36c   :  { %v712_v4 = vpop.permute.xlu1 %711 }
 0x36d   :  { %v1844_v25 = vsel %vm394_vm2, %v1731_v45, %v712_v4 }
 0x36e   :  { %v748_v6 = vmul.f32 %v1242_v30, %v1844_v25 }
 0x370   :  { %v710_v33 = vpop.permute.xlu1 %709  ;;  %v759_v7 = vsel %vm755_vm4, %v748_v6, 0.0 }
 0x371   :  { %v1850_v38 = vsel %vm394_vm2, %v1734_v49, %v710_v33  ;;  %760 = vadd.xlane.f32.xlu1 %v759_v7 }
 0x372   :  { %v747_v8 = vmul.f32 %v1242_v30, %v1850_v38 }
 0x374   :  { %v716_v11 = vpop.permute.xlu1 %715  ;;  %v756_v12 = vsel %vm755_vm4, %v747_v8, 0.0 }
 0x375   :  { %v1856_v45 = vsel %vm394_vm2, %v1739_v54, %v716_v11  ;;  %757 = vadd.xlane.f32.xlu0 %v756_v12 }
 0x376   :  { %v714_v14 = vpop.permute.xlu0 %713  ;;  %v750_v15 = vmul.f32 %v1242_v30, %v1856_v45 }
 0x377   :  { %v1861_v16 = vsel %vm394_vm2, %v1742_v58, %v714_v14 }
 0x378   :  { %v765_v49 = vsel %vm755_vm4, %v750_v15, 0.0  ;;  %v749_v17 = vmul.f32 %v1242_v30, %v1861_v16 }
 0x379   :  { %766 = vadd.xlane.f32.xlu0 %v765_v49 }
 0x37a   :  { %v720_v19 = vpop.permute.xlu1 %719  ;;  %v762_v54 = vsel %vm755_vm4, %v749_v17, 0.0 }
 0x37b   :  { %v1867_v20 = vsel %vm394_vm2, %v1746_v63, %v720_v19 }
 0x37c   :  { %v752_v21 = vmul.f32 %v1242_v30, %v1867_v20 }
 0x37d   :  { %763 = vadd.xlane.f32.xlu0 %v762_v54 }
 0x37e   :  { %v718_v22 = vpop.permute.xlu0 %717  ;;  %v771_v23 = vsel %vm755_vm4, %v752_v21, 0.0 }
 0x37f   :  { %v1873_v58 = vsel %vm394_vm2, %v1752_v5, %v718_v22  ;;  %v76_v22 = vld [vmem:[%s1972_s6 + $0x8] sm:$0xff] }
 0x380   :  { %v751_v26 = vmul.f32 %v1242_v30, %v1873_v58 }
 0x381   :  { %772 = vadd.xlane.f32.xlu0 %v771_v23  ;;  %v77_v23 = vld [vmem:[%s1972_s6 + $0x10] sm:$0xff] }
 0x382   :  { %v722_v27 = vpop.permute.xlu0 %721  ;;  %v768_v28 = vsel %vm755_vm4, %v751_v26, 0.0  ;;  %v78_v26 = vld [vmem:[%s1972_s6 + $0x18] sm:$0xff] }
 0x383   :  { %v1880_v63 = vsel %vm394_vm2, %v1764_v24, %v722_v27  ;;  %769 = vadd.xlane.f32.xlu1 %v768_v28  ;;  %v75_v24 = vld [vmem:[%s1972_s6] sm:$0xff]  ;;  %v80_v28 = vld [vmem:[%s1972_s6 + $0x28] sm:$0xff] }
 0x384   :  { %v753_v29 = vmul.f32 %v1242_v30, %v1880_v63  ;;  %1400 = vmatprep.mubr.msk.f32.mxu1 %vm507_vm3, %v75_v24  ;;  %v79_v27 = vld [vmem:[%s1972_s6 + $0x20] sm:$0xff] }
 0x386   :  { %v724_v31 = vpop.permute.xlu1 %723  ;;  %v774_v32 = vsel %vm755_vm4, %v753_v29, 0.0  ;;  %v81_v29 = vld [vmem:[%s1972_s6 + $0x30] sm:$0xff] }
 0x387   :  { %v1886_v5 = vsel %vm394_vm2, %v1756_v13, %v724_v31  ;;  %775 = vadd.xlane.f32.xlu1 %v774_v32  ;;  %v82_v31 = vld [vmem:[%s1972_s6 + $0x38] sm:$0xff] }
 0x388   :  { %v754_v34 = vmul.f32 %v1242_v30, %v1886_v5 }
 0x38a   :  { %v777_v35 = vsel %vm755_vm4, %v754_v34, 0.0 }
 0x38b   :  { %778 = vadd.xlane.f32.xlu0 %v777_v35 }
 0x3fa   :  { %v761_v40 = vpop.xlane.xlu1 %760 }
 0x3fe   :  { %v758_v36 = vpop.xlane.xlu0 %757 }
 0x402   :  { %v767_v39 = vpop.xlane.xlu0 %766 }
 0x406   :  { %v764_v41 = vpop.xlane.xlu0 %763 }
 0x40a   :  { %v773_v44 = vpop.xlane.xlu0 %772 }
 0x40b   :  { %v781_v47 = vmax.f32 %v761_v40, %v773_v44 }
 0x40c   :  { %v770_v42 = vpop.xlane.xlu1 %769 }
 0x40d   :  { %v780_v43 = vmax.f32 %v758_v36, %v770_v42 }
 0x40f   :  { %v784_v51 = vmax.f32 %v780_v43, %v781_v47 }
 0x410   :  { %v776_v13 = vpop.xlane.xlu1 %775 }
 0x411   :  { %v782_v48 = vmax.f32 %v764_v41, %v776_v13 }
 0x414   :  { %v779_v46 = vpop.xlane.xlu0 %778 }
 0x415   :  { %v783_v50 = vmax.f32 %v767_v39, %v779_v46 }
 0x417   :  { %v785_v52 = vmax.f32 %v782_v48, %v783_v50 }
 0x419   :  { %v786_v53 = vmax.f32 %v784_v51, %v785_v52 }
 0x41b   :  { %v787_v55 = vrot.slane %v786_v53, 4 }
 0x41d   :  { %v788_v56 = vmax.f32 %v786_v53, %v787_v55 }
 0x41f   :  { %v789_v57 = vrot.slane %v788_v56, 2 }
 0x421   :  { %v790_v59 = vmax.f32 %v788_v56, %v789_v57 }
 0x423   :  { %v791_v60 = vrot.slane %v790_v59, 1 }
 0x425   :  { %v792_v61 = vmax.f32 %v790_v59, %v791_v60 }
 0x427   :  { %v800_v62 = vsub.f32 %v779_v46, %v792_v61  ;;  %v799_v0 = vsub.f32 %v776_v13, %v792_v61  ;;  %v798_v10 = vsub.f32 %v773_v44, %v792_v61  ;;  %v797_v2 = vsub.f32 %v770_v42, %v792_v61 }
 0x428   :  { %v796_v37 = vsub.f32 %v767_v39, %v792_v61  ;;  %v795_v30 = vsub.f32 %v764_v41, %v792_v61  ;;  %v794_v6 = vsub.f32 %v761_v40, %v792_v61  ;;  %v793_v7 = vsub.f32 %v758_v36, %v792_v61  ;;  %v65_v61 = vld [vmem:[%s1970_s4] sm:$0xff] }
 0x429   :  { %v815_v1 = vmul.f32 1.442695, %v800_v62  ;;  %v813_v9 = vmul.f32 1.442695, %v799_v0  ;;  %v811_v18 = vmul.f32 1.442695, %v798_v10  ;;  %1428 = vmatprep.mubr.msk.f32.mxu0 %vm507_vm3, %v65_v61 }
 0x42a   :  { %v809_v3 = vmul.f32 1.442695, %v797_v2  ;;  %v807_v4 = vmul.f32 1.442695, %v796_v37  ;;  %v805_v33 = vmul.f32 1.442695, %v795_v30 }
 0x42b   :  { %1480 = vpow2.f32 %v815_v1  ;;  %v803_v8 = vmul.f32 1.442695, %v794_v6  ;;  %v801_v11 = vmul.f32 1.442695, %v793_v7 }
 0x42c   :  { %1482 = vpow2.f32 %v813_v9 }
 0x42d   :  { %1484 = vpow2.f32 %v811_v18 }
 0x42e   :  { %1486 = vpow2.f32 %v809_v3 }
 0x42f   :  { %1488 = vpow2.f32 %v807_v4 }
 0x430   :  { %1490 = vpow2.f32 %v805_v33 }
 0x431   :  { %1492 = vpow2.f32 %v803_v8 }
 0x432   :  { %1494 = vpow2.f32 %v801_v11 }
 0x438   :  { %v1481_v12 = vpop.eup %1480 }
 0x439   :  { %1384 = vmatprep.subr.mxu1 %v1481_v12  ;;  %v1483_v14 = vpop.eup %1482 }
 0x43a   :  { %1385 = vmatpush3.msra.mxu1 %v1481_v12  ;;  %v1485_v15 = vpop.eup %1484 }
 0x43b   :  { %1386 = vmatprep.subr.mxu1 %v1483_v14  ;;  %v1487_v49 = vpop.eup %1486 }
 0x43c   :  { %1387 = vmatpush3.msra.mxu1 %v1483_v14  ;;  %v1489_v17 = vpop.eup %1488 }
 0x43d   :  { %1388 = vmatprep.subr.mxu1 %v1485_v15  ;;  %v1491_v19 = vpop.eup %1490 }
 0x43e   :  { %1389 = vmatpush3.msra.mxu1 %v1485_v15  ;;  %v1493_v54 = vpop.eup %1492 }
 0x43f   :  { %1390 = vmatprep.subr.mxu1 %v1487_v49  ;;  %v1495_v21 = vpop.eup %1494 }
 0x440   :  { %1391 = vmatpush3.msra.mxu1 %v1487_v49 }
 0x441   :  { %1392 = vmatprep.subr.mxu1 %v1489_v17 }
 0x442   :  { %1393 = vmatpush3.msra.mxu1 %v1489_v17 }
 0x443   :  { %1394 = vmatprep.subr.mxu1 %v1491_v19 }
 0x444   :  { %1395 = vmatpush3.msra.mxu1 %v1491_v19 }
 0x445   :  { %1396 = vmatprep.subr.mxu1 %v1493_v54 }
 0x446   :  { %1397 = vmatpush3.msra.mxu1 %v1493_v54 }
 0x447   :  { %1398 = vmatprep.subr.mxu1 %v1495_v21 }
 0x448   :  { %1399 = vmatpush3.msra.mxu1 %v1495_v21 }
 0x449   :  { %1401 = vmatmul.mubr.msk.f32.vlgmr.msra.gmra.mxu1 %vm507_vm3, %v76_v22 }
 0x44a   :  { %1403 = vmatprep.mubr.msk.f32.mxu1 %vm507_vm3, %v77_v23 }
 0x44d   :  { %1404 = vmatmul.mubr.msk.f32.gmra.mxu1 %vm507_vm3, %v78_v26 }
 0x44e   :  { %1406 = vmatprep.mubr.msk.f32.mxu1 %vm507_vm3, %v79_v27 }
 0x451   :  { %1407 = vmatmul.mubr.msk.f32.gmra.mxu1 %vm507_vm3, %v80_v28 }
 0x452   :  { %1409 = vmatprep.mubr.msk.f32.mxu1 %vm507_vm3, %v81_v29 }
 0x455   :  { %1410 = vmatmul.mubr.msk.f32.gmra.mxu1 %vm507_vm3, %v82_v31 }
 0x509   :  { %v1402_v32 = vpop.f32.mrf.mxu1 }
 0x50b   :  { %v907_v34 = vpop.f32.mrf.mxu1 }
 0x50d   :  { %v1405_v35 = vpop.f32.mrf.mxu1 }
 0x50f   :  { %v917_v24 = vpop.f32.mrf.mxu1 }
 0x511   :  { %v1408_v36 = vpop.f32.mrf.mxu1 }
 0x513   :  { %v927_v39 = vpop.f32.mrf.mxu1 }
 0x515   :  { %v1411_v40 = vpop.f32.mrf.mxu1 }
 0x516   :  { %1496 = vrcp.f32 %v1411_v40 }
 0x517   :  { %1498 = vrcp.f32 %v1408_v36  ;;  %v937_v41 = vpop.f32.mrf.mxu1 }
 0x518   :  { %1500 = vrcp.f32 %v937_v41 }
 0x519   :  { %1502 = vrcp.f32 %v1405_v35 }
 0x51a   :  { %1504 = vrcp.f32 %v927_v39 }
 0x51b   :  { %1506 = vrcp.f32 %v1402_v32 }
 0x51c   :  { %1508 = vrcp.f32 %v917_v24 }
 0x51d   :  { %1510 = vrcp.f32 %v907_v34 }
 0x523   :  { %v1497_v42 = vpop.eup %1496 }
 0x524   :  { %v1499_v44 = vpop.eup %1498  ;;  %v961_v13 = vmul.f32 %v1497_v42, %v1481_v12  ;;  %v1512_v12 = vld [vmem:[%s1967_s1] sm:$0xff] }
 0x525   :  { %v1501_v43 = vpop.eup %1500  ;;  %v957_v48 = vmul.f32 %v1499_v44, %v1485_v15  ;;  %v1513_v15 = vld [vmem:[%s1967_s1 + $0x8] sm:$0xff]  ;;  %s1514_s1 = scalar_lea.vmem %s1207_s0, 256 }
 0x526   :  { %999 = vperm.xlu1 %1447, %v961_v13   ;;  %v959_v46 = vmul.f32 %v1501_v43, %v1483_v14  ;;  %v1503_v47 = vpop.eup %1502  ;;  %p1515_p0 = scmp.ne.s32.totalorder %s1207_s0, %s1514_s1  ;;  %p1520_p2 = scmp.lt.s32.totalorder %s1514_s1, %s1514_s1 }
 0x527   :  { %v1505_v50 = vpop.eup %1504  ;;  %v953_v51 = vmul.f32 %v1503_v47, %v1489_v17  ;;  %v1253_v17 = vld [vmem:[%s1976_s10] ss:$0 sm:$0xff] }
 0x528   :  { %994 = vperm.xlu0 %1446, %v959_v46   ;;  %v1507_v52 = vpop.eup %1506  ;;  %v955_v53 = vmul.f32 %v1505_v50, %v1487_v49  ;;  %p1521_p3 = por %p1520_p2, %p1519_p1 }
 0x529   :  { %v1509_v55 = vpop.eup %1508  ;;  %v949_v56 = vmul.f32 %v1507_v52, %v1493_v54 }
 0x52a   :  { %989 = vperm.xlu1 %1447, %v957_v48   ;;  %v951_v57 = vmul.f32 %v1509_v55, %v1491_v19  ;;  %v1511_v59 = vpop.eup %1510  ;;  %p1522_p4 = pnand %p1521_p3, %p1515_p0 }
 0x52b   :  { %v947_v60 = vmul.f32 %v1511_v59, %v1495_v21 }
 0x52c   :  { %979 = vperm.xlu0 %1446, %v953_v51  }
 0x52e   :  { %984 = vperm.xlu1 %1447, %v955_v53  }
 0x530   :  { %969 = vperm.xlu0 %1446, %v949_v56  }
 0x532   :  { %974 = vperm.xlu1 %1447, %v951_v57  }
 0x536   :  { %964 = vperm.xlu1 %1447, %v947_v60  }
 0x5a1   :  { %v1000_v62 = vpop.permute.xlu1 %999 }
 0x5a2   :  { %v1009_v0 = vmul.f32 %v1000_v62, %v1886_v5 }
 0x5a3   :  { %v995_v10 = vpop.permute.xlu0 %994 }
 0x5a4   :  { %v1008_v1 = vmul.f32 %v995_v10, %v1880_v63  ;;  %1412 = vmatprep.subr.mxu0 %v1009_v0 }
 0x5a5   :  { %1413 = vmatpush3.msra.mxu0 %v1009_v0  ;;  %v990_v9 = vpop.permute.xlu1 %989 }
 0x5a6   :  { %v1007_v2 = vmul.f32 %v990_v9, %v1867_v20  ;;  %1414 = vmatprep.subr.mxu0 %v1008_v1 }
 0x5a7   :  { %1415 = vmatpush3.msra.mxu0 %v1008_v1  ;;  %v980_v18 = vpop.permute.xlu0 %979 }
 0x5a8   :  { %1416 = vmatprep.subr.mxu0 %v1007_v2  ;;  %v1005_v30 = vmul.f32 %v980_v18, %v1856_v45  ;;  %v66_v45 = vld [vmem:[%s1970_s4 + $0x8] sm:$0xff] }
 0x5a9   :  { %v985_v37 = vpop.permute.xlu1 %984  ;;  %1417 = vmatpush3.msra.mxu0 %v1007_v2 }
 0x5aa   :  { %v1006_v3 = vmul.f32 %v985_v37, %v1873_v58 }
 0x5ab   :  { %v970_v5 = vpop.permute.xlu0 %969 }
 0x5ac   :  { %1418 = vmatprep.subr.mxu0 %v1006_v3  ;;  %v1003_v20 = vmul.f32 %v970_v5, %v1844_v25  ;;  %v1102_v25 = vld [vmem:[%s1975_s9 + $0x8] sm:$0xff] }
 0x5ad   :  { %v975_v4 = vpop.permute.xlu1 %974  ;;  %1419 = vmatpush3.msra.mxu0 %v1006_v3 }
 0x5ae   :  { %v1004_v63 = vmul.f32 %v975_v4, %v1861_v16  ;;  %1420 = vmatprep.subr.mxu0 %v1005_v30  ;;  %v1103_v16 = vld [vmem:[%s1975_s9 + $0x10] sm:$0xf] }
 0x5af   :  { %1421 = vmatpush3.msra.mxu0 %v1005_v30  ;;  %1431 = vmatprep.subr.msk.mxu1 %vm1118_vm5, %v1103_v16 }
 0x5b0   :  { %1422 = vmatprep.subr.mxu0 %v1004_v63  ;;  %1432 = vmatpush3.msk.msra.mxu1 %vm1118_vm5, %v1103_v16 }
 0x5b1   :  { %v965_v6 = vpop.permute.xlu1 %964  ;;  %1423 = vmatpush3.msra.mxu0 %v1004_v63  ;;  %1433 = vmatprep.subr.mxu1 %v1102_v25 }
 0x5b2   :  { %v1002_v33 = vmul.f32 %v965_v6, %v1850_v38  ;;  %1424 = vmatprep.subr.mxu0 %v1003_v20  ;;  %v1101_v38 = vld [vmem:[%s1975_s9] sm:$0xff]  ;;  %1434 = vmatpush3.msra.mxu1 %v1102_v25 }
 0x5b3   :  { %1425 = vmatpush3.msra.mxu0 %v1003_v20  ;;  %1435 = vmatprep.subr.mxu1 %v1101_v38 }
 0x5b4   :  { %1426 = vmatprep.subr.mxu0 %v1002_v33  ;;  %1436 = vmatpush3.msra.mxu1 %v1101_v38 }
 0x5b5   :  { %1427 = vmatpush3.msra.mxu0 %v1002_v33 }
 0x5b6   :  { %1429 = vmatmul.mubr.msk.f32.vlgmr.msra.gmra.mxu0 %vm507_vm3, %v66_v45 }
 0x676   :  { %v1430_v58 = vpop.f32.mrf.mxu0 }
 0x677   :  { %1095 = vrot.lane.b32.xlu1 %v1430_v58, %s1539_s5 }
 0x678   :  { %v1082_v7 = vpop.f32.mrf.mxu0 }
 0x679   :  { %1093 = vrot.lane.b32.xlu0 %v1082_v7, %s1539_s5 }
 0x6e9   :  { %v1096_v8 = vpop.permute.xlu1 %1095 }
 0x6ea   :  { %v1100_v49 = vsel %vm394_vm2, %v1513_v15, %v1096_v8 }
 0x6eb   :  { %v1094_v11 = vpop.permute.xlu0 %1093 }
 0x6ec   :  { %v1099_v14 = vsel %vm394_vm2, %v1512_v12, %v1094_v11 }
 0x6ed   :  { %1437 = vmatprep.mubr.msk.f32.mxu1 %vm1111_vm6, %v1099_v14 }
 0x6ee   :  { %1438 = vmatmul.mubr.msk.f32.vlgmr.msra.gmra.mxu1 %vm1111_vm6, %v1100_v49 }
 0x7ae   :  { %v1439_v19 = vpop.f32.mrf.mxu1 }
 0x7af   :  { %v1194_v54 = vadd.f32 %v1439_v19, %v1253_v17 }
 0x7b0   :  { %v1188_v21 = vpop.f32.mrf.mxu1 }
 0x7b1   :  { %v1198_v22 = vmax.f32 %v1194_v54, 0.0  ;;  %v1189_v23 = vadd.f32 %v1253_v17, %v1188_v21 }
 0x7b3   :  { %1200 = vst.msk [vmem:[#allocation2 + $0x8] sm:$0xff] %vm85_vm0, %v1198_v22  ;;  %v1197_v26 = vmax.f32 %v1189_v23, 0.0 }
 0x7b5   :  { %1199 = vst.msk [vmem:[#allocation2] sm:$0xff] %vm85_vm0, %v1197_v26 }
 0x7b6   :  { %1525 = shalt.err (!%p1522_p4)
}
 0x7b7   :  { %s1541_s10 = smov 128  }
 0x7b8   :  { %1212 = dma.vmem_to_hbm [thread:$0]  %s1207_s0, 256, %s1977_s11, [#allocation3], %s1541_s10, %s1541_s10, %s1539_s5  }
 0x7b9   :  { %1534 = dma.done.wait [#allocation3], 256  }
 0x7ba   :  { %1535 = vsyncadd [#allocation3], 4294967040 }
 0x7bb   :  { %1216 = vsyncpa [#allocation3], 1 }

</bundles_post_ra>
